<compile_context>
chip_gen: v7x
topology: tpu7x:2x2x1
jax: 0.10.0
libtpu: 0.0.40
codegen_flags: <defaults>
</compile_context>

<pallas_src>
import math

import jax
import jax.numpy as jnp
from jax.experimental import pallas as pl
from jax.experimental.pallas import tpu as pltpu

LANE = 128


def _round_up(x, m):
    return ((x + m - 1) // m) * m


def _maxout_kernel_single_k(x_ref, w_ref, b_ref, o_ref, max_acc):
    # grid = (row tiles, col tiles, pool groups); whole d_in in one K tile.
    p = pl.program_id(2)
    n_p = pl.num_programs(2)

    @pl.when(p == 0)
    def _():
        max_acc[...] = jnp.full_like(max_acc, -jnp.inf)

    # (tm, d_in) @ (d_in, tn) on the MXU with f32 accumulation, bias in f32.
    z = jnp.dot(x_ref[...], w_ref[0], preferred_element_type=jnp.float32)
    z = z + b_ref[0].astype(jnp.float32)
    max_acc[...] = jnp.maximum(max_acc[...], z)

    # Last pool group for this (row, col) tile: single lane-dense writeback.
    @pl.when(p == n_p - 1)
    def _():
        o_ref[...] = max_acc[...].astype(o_ref.dtype)


def _maxout_kernel_multi_k(x_ref, w_ref, b_ref, o_ref, dot_acc, max_acc):
    # grid = (row tiles, col tiles, pool groups, K tiles)
    p = pl.program_id(2)
    k = pl.program_id(3)
    n_p = pl.num_programs(2)
    n_k = pl.num_programs(3)

    # New (row, col) tile: reset the running max.
    @pl.when(jnp.logical_and(p == 0, k == 0))
    def _():
        max_acc[...] = jnp.full_like(max_acc, -jnp.inf)

    # New pool group: reset the dot accumulator.
    @pl.when(k == 0)
    def _():
        dot_acc[...] = jnp.zeros_like(dot_acc)

    # (tm, tk) @ (tk, tn) on the MXU with f32 accumulation.
    dot_acc[...] += jnp.dot(x_ref[...], w_ref[0],
                            preferred_element_type=jnp.float32)

    # Finished this pool group's contraction: bias + running max.
    @pl.when(k == n_k - 1)
    def _():
        z = dot_acc[...] + b_ref[0].astype(jnp.float32)
        max_acc[...] = jnp.maximum(max_acc[...], z)

    # Last (pool, K) step for this (row, col) tile: lane-dense writeback.
    @pl.when(jnp.logical_and(p == n_p - 1, k == n_k - 1))
    def _():
        o_ref[...] = max_acc[...].astype(o_ref.dtype)


def prepare_maxout_params(weight, bias, d_in, d_out, pool_size, *,
                          compute_dtype=None, tk_max=512, tn_max=512):
    """One-time regroup/pad of the PyTorch nn.Linear parameters.

    weight: (d_out*pool, d_in) torch Linear layout (row j*pool + p = feature j,
            pool member p, matching out.view(..., d_out, pool)).
    bias:   (d_out*pool,)
    """
    assert weight.shape == (d_out * pool_size, d_in)
    assert bias.shape == (d_out * pool_size,)
    assert tk_max % LANE == 0 and tn_max % LANE == 0

    # Contraction tiling (only tile when d_in is large).
    if d_in <= tk_max:
        tk, d_in_p = d_in, d_in
    else:
        tk = tk_max
        d_in_p = _round_up(d_in, tk)

    # Output-column tiling: lane-dense (multiple of 128), tiled when large.
    d_out_l = _round_up(d_out, LANE)
    if d_out_l <= tn_max:
        tn, d_out_p = d_out_l, d_out_l
    else:
        tn = tn_max
        d_out_p = _round_up(d_out, tn)

    # w_k[p, i, j] = weight[j*pool + p, i]  -> (pool, d_in, d_out)
    w_k = jnp.transpose(weight.reshape(d_out, pool_size, d_in), (1, 2, 0))
    # b_k[p, 0, j] = bias[j*pool + p]       -> (pool, 1, d_out)
    b_k = bias.reshape(d_out, pool_size).T.reshape(pool_size, 1, d_out)

    # Zero-pad K and output-lane dims (padded cols are sliced off afterwards).
    w_k = jnp.pad(w_k, ((0, 0), (0, d_in_p - d_in), (0, d_out_p - d_out)))
    b_k = jnp.pad(b_k, ((0, 0), (0, 0), (0, d_out_p - d_out)))

    if compute_dtype is not None:
        w_k = w_k.astype(compute_dtype)       # e.g. jnp.bfloat16 on v6e/v7x
    b_k = b_k.astype(jnp.float32)             # bias always added in f32

    return dict(w_k=w_k, b_k=b_k, d_in=d_in, d_out=d_out,
                pool_size=pool_size, d_in_p=d_in_p, d_out_p=d_out_p,
                tk=tk, tn=tn)


def maxout_forward(x, params, *, tm=256):
    """x: (..., d_in); returns (..., d_out)."""
    d_in, d_out = params["d_in"], params["d_out"]
    pool_size = params["pool_size"]
    d_in_p, d_out_p = params["d_in_p"], params["d_out_p"]
    tk, tn = params["tk"], params["tn"]
    w_k, b_k = params["w_k"], params["b_k"]

    lead_shape = x.shape[:-1]
    assert x.shape[-1] == d_in
    M = int(math.prod(lead_shape))

    # Big MXU-filling row tile by default, shrunk for tiny batches; always a
    # multiple of 8 sublanes.  Pad M up instead of asserting divisibility.
    tm_eff = min(tm, _round_up(M, 8))
    M_p = _round_up(M, tm_eff)

    x2 = x.reshape(M, d_in)
    if w_k.dtype != x2.dtype:
        x2 = x2.astype(w_k.dtype)             # bf16 matmul path if requested
    if (M_p, d_in_p) != (M, d_in):
        x2 = jnp.pad(x2, ((0, M_p - M), (0, d_in_p - d_in)))

    n_m = M_p // tm_eff
    n_n = d_out_p // tn
    n_k = d_in_p // tk
    multi_k = n_k > 1

    # Per-step VMEM (double-buffered ins/outs + accumulators); explicit scoped
    # limit with headroom, clamped to be v7x-safe (<= 64 MiB).
    itm = jnp.dtype(x2.dtype).itemsize
    itw = jnp.dtype(w_k.dtype).itemsize
    ito = jnp.dtype(x.dtype).itemsize
    n_acc = 2 if multi_k else 1
    need = (2 * tm_eff * tk * itm + 2 * tk * tn * itw + 2 * tn * 4
            + 2 * tm_eff * tn * ito + n_acc * tm_eff * tn * 4)
    vmem_limit = min(max(2 * need, 32 * 1024 * 1024), 64 * 1024 * 1024)

    cost = pl.CostEstimate(
        flops=2 * M_p * d_in_p * pool_size * d_out_p,
        transcendentals=0,
        bytes_accessed=(x2.size * itm + w_k.size * itw + b_k.size * 4
                        + M_p * d_out_p * ito))

    if multi_k:
        kernel = _maxout_kernel_multi_k
        grid = (n_m, n_n, pool_size, n_k)
        in_specs = [
            pl.BlockSpec((tm_eff, tk), lambda i, j, p, k: (i, k)),
            pl.BlockSpec((1, tk, tn), lambda i, j, p, k: (p, k, j)),
            pl.BlockSpec((1, 1, tn), lambda i, j, p, k: (p, 0, j)),
        ]
        out_specs = pl.BlockSpec((tm_eff, tn), lambda i, j, p, k: (i, j))
        scratch_shapes = [
            pltpu.VMEM((tm_eff, tn), jnp.float32),   # dot accumulator
            pltpu.VMEM((tm_eff, tn), jnp.float32),   # running max
        ]
        dims = ("parallel", "parallel", "arbitrary", "arbitrary")
    else:
        kernel = _maxout_kernel_single_k
        grid = (n_m, n_n, pool_size)
        in_specs = [
            pl.BlockSpec((tm_eff, d_in_p), lambda i, j, p: (i, 0)),
            pl.BlockSpec((1, d_in_p, tn), lambda i, j, p: (p, 0, j)),
            pl.BlockSpec((1, 1, tn), lambda i, j, p: (p, 0, j)),
        ]
        out_specs = pl.BlockSpec((tm_eff, tn), lambda i, j, p: (i, j))
        scratch_shapes = [
            pltpu.VMEM((tm_eff, tn), jnp.float32),   # running max
        ]
        dims = ("parallel", "parallel", "arbitrary")

    out = pl.pallas_call(
        kernel,
        out_shape=jax.ShapeDtypeStruct((M_p, d_out_p), x.dtype),
        grid_spec=pltpu.PrefetchScalarGridSpec(
            num_scalar_prefetch=0,
            grid=grid,
            in_specs=in_specs,
            out_specs=out_specs,
            scratch_shapes=scratch_shapes,
        ),
        compiler_params=pltpu.CompilerParams(
            dimension_semantics=dims,
            vmem_limit_bytes=vmem_limit),
        cost_estimate=cost,
    )(x2, w_k, b_k)

    return out[:M, :d_out].reshape(*lead_shape, d_out)


def maxout_reference(x, weight, bias, d_out, pool_size):
    out = jnp.einsum("...i,oi->...o", x, weight) + bias
    out = out.reshape(*out.shape[:-1], d_out, pool_size)
    return out.max(axis=-1)


def _make_params(key, d_in, d_out, pool_size):
    kw, kb = jax.random.split(key)
    bound = 1.0 / (d_in ** 0.5)
    weight = jax.random.uniform(kw, (d_out * pool_size, d_in),
                                minval=-bound, maxval=bound, dtype=jnp.float32)
    bias = jax.random.uniform(kb, (d_out * pool_size,),
                              minval=-bound, maxval=bound, dtype=jnp.float32)
    return weight, bias


if __name__ == "__main__":
    key = jax.random.PRNGKey(0)
    k1, k2, k3, k4 = jax.random.split(key, 4)

    # --- Test 1: single-K-tile fast path (matches the module's small config).
    d_in, d_out, pool_size = 32, 32, 4
    batch_shape = (2, 8)
    x = jax.random.normal(k1, batch_shape + (d_in,), dtype=jnp.float32)
    weight, bias = _make_params(k2, d_in, d_out, pool_size)

    params = prepare_maxout_params(weight, bias, d_in, d_out, pool_size)
    y = jax.block_until_ready(maxout_forward(x, params))
    y_ref = maxout_reference(x, weight, bias, d_out, pool_size)
    assert y.shape == batch_shape + (d_out,)
    assert jnp.allclose(y, y_ref, atol=1e-5, rtol=1e-5), "mismatch (test 1)"

    # --- Test 2: multi-K + multi-column-tile path, padded rows/cols.
    d_in2, d_out2, pool2 = 256, 200, 2
    batch2 = (3, 5)
    x2 = jax.random.normal(k3, batch2 + (d_in2,), dtype=jnp.float32)
    weight2, bias2 = _make_params(k4, d_in2, d_out2, pool2)

    params2 = prepare_maxout_params(weight2, bias2, d_in2, d_out2, pool2,
                                    tk_max=128, tn_max=128)
    y2 = jax.block_until_ready(maxout_forward(x2, params2))
    y2_ref = maxout_reference(x2, weight2, bias2, d_out2, pool2)
    assert y2.shape == batch2 + (d_out2,)
    assert jnp.allclose(y2, y2_ref, atol=1e-4, rtol=1e-4), "mismatch (test 2)"

    print("KERNEL_OK")
</pallas_src>

<mosaic_0001>
module attributes {stable_mosaic.version = 11 : i64} {
  func.func @_maxout_kernel_single_k(%arg0: i32, %arg1: i32, %arg2: i32, %arg3: memref<16x32xf32, #tpu.memory_space<vmem>>, %arg4: memref<1x32x128xf32, #tpu.memory_space<vmem>>, %arg5: memref<1x1x128xf32, #tpu.memory_space<vmem>>, %arg6: memref<16x128xf32, #tpu.memory_space<vmem>>, %arg7: memref<16x128xf32, #tpu.memory_space<vmem>>) attributes {dimension_semantics = [#tpu.dimension_semantics<parallel>, #tpu.dimension_semantics<parallel>, #tpu.dimension_semantics<arbitrary>], iteration_bounds = array<i64: 1, 1, 4>, scalar_prefetch = 0 : i64, scratch_operands = 1 : i64, tpu.core_type = #tpu.core_type<tc>, window_params = [{transform_indices = @transform_0, window_bounds = array<i64: 16, 32>}, {transform_indices = @transform_1, window_bounds = array<i64: 1, 32, 128>}, {transform_indices = @transform_2, window_bounds = array<i64: 1, 1, 128>}, {transform_indices = @transform_3, window_bounds = array<i64: 16, 128>}]} {
    %c0_i32 = arith.constant 0 : i32
    %0 = arith.cmpi eq, %arg2, %c0_i32 : i32
    %1 = arith.extui %0 : i1 to i32
    %c0_i32_0 = arith.constant 0 : i32
    %2 = arith.cmpi ne, %1, %c0_i32_0 : i32
    scf.if %2 {
      %cst_13 = arith.constant 0xFF800000 : f32
      %17 = vector.broadcast %cst_13 : f32 to vector<16x128xf32>
      %c0_14 = arith.constant 0 : index
      %c0_15 = arith.constant 0 : index
      %18 = vector.load %arg7[%c0_14, %c0_15] : memref<16x128xf32, #tpu.memory_space<vmem>>, vector<16x128xf32>
      tpu.vector_store %arg7[%c0_14, %c0_15], %17 {strides = array<i32>} : memref<16x128xf32, #tpu.memory_space<vmem>>, vector<16x128xf32>,
    } else {
    }
    %c0 = arith.constant 0 : index
    %c0_1 = arith.constant 0 : index
    %3 = vector.load %arg3[%c0, %c0_1] : memref<16x32xf32, #tpu.memory_space<vmem>>, vector<16x32xf32>
    %c0_2 = arith.constant 0 : index
    %c0_3 = arith.constant 0 : index
    %c0_4 = arith.constant 0 : index
    %4 = vector.load %arg4[%c0_2, %c0_3, %c0_4] : memref<1x32x128xf32, #tpu.memory_space<vmem>>, vector<1x32x128xf32>
    %5 = vector.shape_cast %4 : vector<1x32x128xf32> to vector<32x128xf32>
    %cst = arith.constant dense<0.000000e+00> : vector<16x128xf32>
    %6 = tpu.matmul %3, %5, %cst {dimension_numbers = #tpu.dot_dimension_numbers<[1], [0], [0], [1], [0, 0, 1, 1], [], []>} : vector<16x32xf32>, vector<32x128xf32>, vector<16x128xf32> -> vector<16x128xf32>
    %c0_5 = arith.constant 0 : index
    %c0_6 = arith.constant 0 : index
    %c0_7 = arith.constant 0 : index
    %7 = vector.load %arg5[%c0_5, %c0_6, %c0_7] : memref<1x1x128xf32, #tpu.memory_space<vmem>>, vector<1x1x128xf32>
    %8 = vector.shape_cast %7 : vector<1x1x128xf32> to vector<1x128xf32>
    %9 = vector.broadcast %8 : vector<1x128xf32> to vector<16x128xf32>
    %10 = arith.addf %6, %9 : vector<16x128xf32>
    %c0_8 = arith.constant 0 : index
    %c0_9 = arith.constant 0 : index
    %11 = vector.load %arg7[%c0_8, %c0_9] : memref<16x128xf32, #tpu.memory_space<vmem>>, vector<16x128xf32>
    %12 = arith.maximumf %11, %10 : vector<16x128xf32>
    %c0_10 = arith.constant 0 : index
    %c0_11 = arith.constant 0 : index
    %13 = vector.load %arg7[%c0_10, %c0_11] : memref<16x128xf32, #tpu.memory_space<vmem>>, vector<16x128xf32>
    tpu.vector_store %arg7[%c0_10, %c0_11], %12 {strides = array<i32>} : memref<16x128xf32, #tpu.memory_space<vmem>>, vector<16x128xf32>,
    %c3_i32 = arith.constant 3 : i32
    %14 = arith.cmpi eq, %arg2, %c3_i32 : i32
    %15 = arith.extui %14 : i1 to i32
    %c0_i32_12 = arith.constant 0 : i32
    %16 = arith.cmpi ne, %15, %c0_i32_12 : i32
    scf.if %16 {
      %c0_13 = arith.constant 0 : index
      %c0_14 = arith.constant 0 : index
      %17 = vector.load %arg7[%c0_13, %c0_14] : memref<16x128xf32, #tpu.memory_space<vmem>>, vector<16x128xf32>
      %c0_15 = arith.constant 0 : index
      %c0_16 = arith.constant 0 : index
      %18 = vector.load %arg6[%c0_15, %c0_16] : memref<16x128xf32, #tpu.memory_space<vmem>>, vector<16x128xf32>
      tpu.vector_store %arg6[%c0_15, %c0_16], %17 {strides = array<i32>} : memref<16x128xf32, #tpu.memory_space<vmem>>, vector<16x128xf32>,
    } else {
    }
    return
  }
  func.func @transform_0(%arg0: i32, %arg1: i32, %arg2: i32) -> (i32, i32) {
    %c0_i32 = arith.constant 0 : i32
    %c0_i32_0 = arith.constant 0 : i32
    return %arg0, %c0_i32 : i32, i32
  }
  func.func @transform_1(%arg0: i32, %arg1: i32, %arg2: i32) -> (i32, i32, i32) {
    %c0_i32 = arith.constant 0 : i32
    %c0_i32_0 = arith.constant 0 : i32
    return %arg2, %c0_i32, %arg1 : i32, i32, i32
  }
  func.func @transform_2(%arg0: i32, %arg1: i32, %arg2: i32) -> (i32, i32, i32) {
    %c0_i32 = arith.constant 0 : i32
    %c0_i32_0 = arith.constant 0 : i32
    return %arg2, %c0_i32, %arg1 : i32, i32, i32
  }
  func.func @transform_3(%arg0: i32, %arg1: i32, %arg2: i32) -> (i32, i32) {
    %c0_i32 = arith.constant 0 : i32
    return %arg0, %arg1 : i32, i32
  }
}

</mosaic_0001>

<bundles_post_ra>
// kernel: tpu_custom_call.1
= control target key start
LH: loop header
LB: loop body
LE: loop exit
PB: predicated region body
PF: predicated region fallthrough
CT: control target
= control target key end

     0   :  { %8 = vsyncpa [#allocation4], 0  ;;  %s969_s0 = inlined_call_operand.hbm [shape: f32[16,32], index: 0, kind: input, shape index: {}]   ;;  %s970_s1 = inlined_call_operand.hbm [shape: f32[4,32,128], index: 1, kind: input, shape index: {}]   ;;  %s971_s2 = inlined_call_operand.vmem [shape: f32[4,1,128], index: 2, kind: input, shape index: {}]   ;;  %s972_s3 = inlined_call_operand.hbm [shape: f32[16,128], index: 3, kind: output, shape index: {}]  }
   0x1   :  { %9 = vsyncpa [#allocation7], 0 }
   0x2   :  { %11 = vsyncpa [#allocation7 + $0x1], 0 }
   0x3   :  { %12 = vsyncpa [#allocation5], 0  ;;  %s773_s12 = smov 0   ;;  %s775_s13 = smov 0  }
   0x4   :  { %s777_s14 = smov 0   ;;  %s779_s15 = smov 0  }
   0x5   :  { %s781_s16 = smov 0   ;;  %s783_s17 = smov 0  }
   0x6 LB: > { %s478_s18 = sadd.s32 4294967295, %s743_s17   ;;  %p85_p0 = scmp.ne.s32.totalorder %s727_s13, %s723_s12  ;;  %s743_s17 = sphi %s783_s17, %s18_s17   ;;  %s739_s16 = sphi %s781_s16, %s990_s16   ;;  %s735_s15 = sphi %s779_s15, %s989_s15   ;;  %s731_s14 = sphi %s777_s14, %s988_s14   ;;  %s727_s13 = sphi %s775_s13, %s987_s13   ;;  %s723_s12 = sphi %s773_s12, %s986_s12  }
   0x7   : > { %p805_p1 = scmp.eq.s32.totalorder %s478_s18, 0  ;;  %p479_p2 = scmp.ge.s32.totalorder %s743_s17, 1 }
   0x8   : > { %p152_p3 = scmp.lt.s32.totalorder %s743_s17, 5  ;;  %s745_s22 = smov [#allocation3]  }
   0x9   : > { %s977_s19 = scalar_select %p805_p1, 1, 0 }
   0xa   : > { %p813_p4 = por %p805_p1, %p85_p0  ;;  %p817_p5 = pnand %p479_p2, %p152_p3 }
   0xb   : > { %s167_s23 = sshll.u32 %s745_s22, 4  ;;  %s30_s25 = sadd.s32 1, %s739_s16  ;;  %s168_s23 = int_to_ptr.vmem [resolvable:$true] %s167_s23 }
   0xc   : > { %s978_s20 = scalar_select %p813_p4, 1, 0 }
   0xd   : > { %s979_s21 = scalar_select %p817_p5, 1, 0 }
   0xe   : > { %p533_p6 = pneg %p817_p5  ;;  %s601_s28 = scalar_lea.hbm %s969_s0, 256 }
   0xf   : > { %p602_p8 = scmp.ne.s32.totalorder %s969_s0, %s601_s28  ;;  %p608_p12 = scmp.lt.u32.totalorder %s601_s28, %s969_s0 }
  0x10   : > { %p825_p7 = pnand %p533_p6, %p805_p1 }
  0x12   : > { %p603_p9 = pneg %p825_p7 }
  0x14   : > { %p604_p10 = pnand %p603_p9, %p602_p8 }
  0x16   : > { %p605_p11 = pneg %p604_p10 }
  0x18   : > { %p610_p13 = pnand %p608_p12, %p605_p11 }
  0x1a   : > { %613 = shalt.err (!%p610_p13)
}
  0x1b   : > { %s614_s6 = scalar_lea.vmem %s168_s23, 256  ;;  %p622_p6 = scmp.lt.s32.totalorder %s168_s23, %s168_s23 }
  0x1c   : > { %p615_p0 = scmp.ne.s32.totalorder %s168_s23, %s614_s6  ;;  %p623_p4 = scmp.lt.s32.totalorder %s614_s6, %s614_s6 }
  0x1e   : > { %p617_p2 = pnand %p615_p0, %p603_p9  ;;  %p624_p1 = por %p623_p4, %p622_p6 }
  0x20   : > { %p618_p3 = pneg %p617_p2 }
  0x22   : > { %p625_p5 = pnand %p624_p1, %p618_p3 }
  0x24   : > { %628 = shalt.err (!%p625_p5)
}
  0x25   : > { %s746_s7 = smov 128   ;;  %s747_s8 = smov 8  }
  0x26   : > { %536 = dma.hbm_to_vmem [thread:$0]  (!%p825_p7), %s969_s0, 256, %s168_s23, [#allocation4], %s746_s7, %s746_s7, %s747_s8  }
  0x27   : > { %p31_p1 = scmp.ge.s32.totalorder %s30_s25, 4  ;;  %s72_s11 = sadd.s32 1, %s731_s14 }
  0x28   : > { %p79_p4 = scmp.ne.s32.totalorder %s731_s14, %s727_s13  ;;  %p80_p5 = scmp.eq.s32.totalorder %s743_s17, 0 }
  0x29   : > { %s992_s25 = smov (%p31_p1, %s30_s25), 0  ;;  %p542_p9 = scmp.lt.s32.totalorder %s743_s17, 4 }
  0x2a   : > { %p81_p8 = por %p80_p5, %p79_p4  ;;  %s67_s12 = ssub.s32 %s739_s16, %s992_s25 }
  0x2b   : > { %s181_s22 = sand.u32 1, %s731_s14   ;;  %p70_p10 = scmp.eq.s32.totalorder %s67_s12, 0 }
  0x2c   : > { %s482_s24 = sshll.u32 %s181_s22, 5  ;;  %s497_s26 = sshll.u32 %s739_s16, 9 }
  0x2d   : > { %s861_s27 = scalar_select %p70_p10, %s731_s14, %s72_s11  }
  0x2e   : > { %s866_s23 = scalar_lea.hbm %s970_s1, %s497_s26  ;;  %s185_s30 = scalar_lea.vmem [#allocation6], %s482_s24 }
  0x2f   : > { %s193_s4 = sshll.u32 %s185_s30, 4  ;;  %p868_p7 = pnand %p542_p9, %p81_p8  ;;  %s872_s4 = int_to_ptr.vmem [resolvable:$true] %s193_s4 }
  0x30   : > { %s874_s6 = scalar_lea.sflag [#allocation7], %s181_s22  ;;  %s629_s9 = scalar_lea.hbm %s866_s23, 512 }
  0x31   : > { %p630_p11 = scmp.ne.s32.totalorder %s866_s23, %s629_s9  ;;  %p631_p12 = pneg %p868_p7 }
  0x32   : > { %s634_s12 = scalar_lea.hbm %s970_s1, 2048  ;;  %p635_p2 = scmp.lt.u32.totalorder %s866_s23, %s970_s1 }
  0x33   : > { %p632_p13 = pnand %p631_p12, %p630_p11  ;;  %p636_p3 = scmp.lt.u32.totalorder %s634_s12, %s629_s9 }
  0x34   : > { %p638_p1 = scmp.lt.u32.totalorder %s629_s9, %s866_s23 }
  0x35   : > { %p633_p0 = pneg %p632_p13  ;;  %p637_p6 = por %p636_p3, %p635_p2 }
  0x37   : > { %p639_p4 = por %p638_p1, %p637_p6 }
  0x39   : > { %p640_p5 = pnand %p639_p4, %p633_p0 }
  0x3b   : > { %643 = shalt.err (!%p640_p5)
}
  0x3c   : > { %s644_s22 = scalar_lea.vmem %s872_s4, 512  ;;  %s748_s28 = smov [#allocation6]  }
  0x3d   : > { %p645_p8 = scmp.ne.s32.totalorder %s872_s4, %s644_s22  ;;  %s649_s29 = sshll.u32 %s748_s28, 4  ;;  %s650_s29 = int_to_ptr.vmem [resolvable:$false] %s649_s29 }
  0x3e   : > { %s651_s30 = scalar_lea.vmem %s650_s29, 1024  ;;  %p652_p11 = scmp.lt.s32.totalorder %s872_s4, %s650_s29 }
  0x3f   : > { %p647_p9 = pnand %p645_p8, %p631_p12  ;;  %p653_p13 = scmp.lt.s32.totalorder %s651_s30, %s644_s22 }
  0x41   : > { %p648_p10 = pneg %p647_p9  ;;  %p654_p2 = por %p653_p13, %p652_p11 }
  0x43   : > { %p655_p3 = pnand %p654_p2, %p648_p10 }
  0x45   : > { %658 = shalt.err (!%p655_p3)
}
  0x46   : > { %540 = dma.hbm_to_vmem [thread:$0]  (!%p868_p7), %s866_s23, 512, %s872_s4, %s874_s6, %s746_s7, %s746_s7, %s747_s8  }
  0x47   : > { %p982_p12 = scmp.ne.s32.totalorder %s979_s21, 0 }
  0x48   : > { %p983_p0 = scmp.ne.s32.totalorder (!%p982_p12), %s977_s19, 0 }
  0x49   : > { %214 = sbr.rel (%p982_p12) target bundleno = 358 (0x166), region = 32 }
  0x50   : > { %710 = dma.done.wait (%p983_p0), [#allocation4], 256  }
  0x51   : > { %712 = vsyncadd (%p983_p0), [#allocation4], 4294967040  ;;  %s220_s9 = sand.u32 1, %s727_s13   ;;  %p984_p6 = scmp.ne.s32.totalorder %s978_s20, 0 }
  0x52   : > { %s487_s5 = sshll.u32 %s220_s9, 5  ;;  %s221_s10 = scalar_lea.sflag [#allocation7], %s220_s9 }
  0x53   : > { %s224_s11 = scalar_lea.vmem [#allocation6], %s487_s5 }
  0x54   : > { %714 = dma.done.wait (%p984_p6), %s221_s10, 512  }
  0x55   : > { %716 = vsyncadd (%p984_p6), %s221_s10, 4294966784  ;;  %p249_p7 = scmp.lt.s32.totalorder %s735_s15, 3  ;;  %p488_p1 = scmp.ne.s32.totalorder %s735_s15, 0 }
  0x56   : > { %v749_v0 = vmov (!%p488_p1), -inf  }
  0x57   : > { %s250_s21 = scalar_select %p249_p7, %s735_s15, 3 }
  0x58   : > { %259 = sbr.rel (%p488_p1) target bundleno = 95 (0x5f), region = 44  ;;  %260 = vst [vmem:[#allocation2] sm:$0xff] (!%p488_p1), %v749_v0  ;;  %261 = vst [vmem:[#allocation2 + $0x8] sm:$0xff] (!%p488_p1), %v749_v0 }
  0x59   : > { %s254_s19 = scalar_lea.vmem %s971_s2, %s250_s21 }
  0x5f PF: > { %v264_v1 = vld [vmem:[%s224_s11] sm:$0xff]  ;;  %v265_v2 = vld [vmem:[%s224_s11 + $0x8] sm:$0xff]  ;;  %v266_v3 = vld [vmem:[%s224_s11 + $0x10] sm:$0xff]  ;;  %vm275_vm0 = vcmask 261120   ;;  %p492_p4 = scmp.ne.s32.totalorder %s735_s15, 3 }
  0x60   : > { %v515_v4 = vpack.c.bf16 %v265_v2, %v264_v1  ;;  %v267_v5 = vld [vmem:[%s224_s11 + $0x18] sm:$0xff]  ;;  %v262_v6 = vld [vmem:[#allocation3] sm:$0xff]  ;;  %v489_v9 = vld [vmem:[%s254_s19] ss:$0 sm:$0xff] }
  0x61   : > { %v519_v7 = vpack.c.bf16 %v267_v5, %v266_v3  ;;  %512 = vmatprep.mubr.msk.f32.mxu0 %vm275_vm0, %v262_v6  ;;  %v263_v8 = vld [vmem:[#allocation3 + $0x8] sm:$0xff]  ;;  %v358_v11 = vld [vmem:[#allocation2 + $0x8] sm:$0xff]  ;;  %v357_v14 = vld [vmem:[#allocation2] sm:$0xff] }
  0x62   : > { %516 = vmatprep.subr.bf16.mxu0 %v515_v4 }
  0x63   : > { %518 = vmatpush3.bf16.msra.mxu0 %v515_v4 }
  0x64   : > { %520 = vmatprep.subr.bf16.mxu0 %v519_v7 }
  0x67   : > { %522 = vmatpush3.bf16.msra.mxu0 %v519_v7 }
  0x6a   : > { %513 = vmatmul.mubr.msk.f32.vlgmr.msra.gmra.mrb[0].mxu0 %vm275_vm0, %v263_v8 }
 0x13d   : > { %v514_v10 = vpop.f32.mrb[0].mxu0  ;;  %366 = sbr.rel (%p492_p4) target bundleno = 332 (0x14c), region = 48 }
 0x13e   : > { %v354_v12 = vadd.f32 %v514_v10, %v489_v9  ;;  %v348_v13 = vpop.f32.mrb[1].mxu0 }
 0x13f   : > { %v349_v15 = vadd.f32 %v489_v9, %v348_v13 }
 0x140   : > { %v360_v16 = vmax.f32 %v358_v11, %v354_v12 }
 0x141   : > { %v359_v17 = vmax.f32 %v357_v14, %v349_v15 }
 0x142   : > { %362 = vst [vmem:[#allocation2 + $0x8] sm:$0xff] %v360_v16 }
 0x143   : > { %361 = vst [vmem:[#allocation2] sm:$0xff] %v359_v17 }
 0x149   : > { %v368_v19 = vld [vmem:[#allocation2 + $0x8] sm:$0xff] }
 0x14a   : > { %v367_v18 = vld [vmem:[#allocation2] sm:$0xff]  ;;  %370 = vst [vmem:[#allocation8 + $0x8] sm:$0xff] %v368_v19 }
 0x14b   : > { %369 = vst [vmem:[#allocation8] sm:$0xff] %v367_v18 }
 0x14c PF: > { %p925_p5 = scmp.eq.s32.totalorder %s478_s18, 3  ;;  %s750_s23 = smov [#allocation8]  }
 0x14d   : > { %s381_s4 = sshll.u32 %s750_s23, 4  ;;  %s382_s4 = int_to_ptr.vmem [resolvable:$true] %s381_s4 }
 0x14e   : > { %s659_s6 = scalar_lea.vmem %s382_s4, 256  ;;  %p666_p11 = scmp.lt.s32.totalorder %s382_s4, %s382_s4 }
 0x14f   : > { %p660_p8 = scmp.ne.s32.totalorder %s382_s4, %s659_s6  ;;  %p667_p13 = scmp.lt.s32.totalorder %s659_s6, %s659_s6 }
 0x151   : > { %p661_p9 = pnand %p660_p8, %p925_p5  ;;  %p668_p2 = por %p667_p13, %p666_p11 }
 0x153   : > { %p662_p10 = pneg %p661_p9 }
 0x155   : > { %p669_p3 = pnand %p668_p2, %p662_p10 }
 0x157   : > { %672 = shalt.err (!%p669_p3)
}
 0x158   : > { %s673_s18 = scalar_lea.hbm %s972_s3, 256 }
 0x159   : > { %p674_p12 = scmp.ne.s32.totalorder %s972_s3, %s673_s18  ;;  %p679_p7 = scmp.lt.u32.totalorder %s673_s18, %s972_s3 }
 0x15b   : > { %p675_p0 = pnand %p674_p12, %p925_p5 }
 0x15d   : > { %p676_p6 = pneg %p675_p0 }
 0x15f   : > { %p681_p1 = pnand %p679_p7, %p676_p6 }
 0x161   : > { %684 = shalt.err (!%p681_p1)
}
 0x162   : > { %s751_s29 = smov 128   ;;  %s752_s30 = smov 8  }
 0x163   : > { %530 = dma.vmem_to_hbm [thread:$0]  (%p925_p5), %s382_s4, 256, %s972_s3, [#allocation5], %s751_s29, %s751_s29, %s752_s30  }
 0x164   : > { %718 = dma.done.wait (%p925_p5), [#allocation5], 256  }
 0x165   : > { %720 = vsyncadd (%p925_p5), [#allocation5], 4294967040 }
 0x166 PF: > { %s18_s17 = sadd.s32 1, %s743_s17   ;;  %s986_s12 = smov %s727_s13 }
 0x167   : > { %p15_p4 = scmp.ge.s32.totalorder %s18_s17, 6   ;;  %s987_s13 = smov %s731_s14 }
 0x168   : > { %s988_s14 = smov %s861_s27  ;;  %s989_s15 = smov %s739_s16 }
 0x169   : > { %s990_s16 = smov %s992_s25  ;;  %17 = sbr.rel (!%p15_p4) target bundleno = 6 (0x6), region = 87 }
 0x170   :  { %397 = vsyncpa [#allocation4], 1 }
 0x171   :  { %399 = vsyncpa [#allocation4 + $0x1], 1 }
 0x172   :  { %400 = vsyncpa [#allocation7], 1 }
 0x173   :  { %402 = vsyncpa [#allocation7 + $0x1], 1 }
 0x174   :  { %403 = vsyncpa [#allocation5], 1 }
 0x175   :  { %405 = vsyncpa [#allocation5 + $0x1], 1 }

</bundles_post_ra>
